<compile_context>
chip_gen: v5e
topology: v5e:2x2
jax: 0.10.0
libtpu: 0.0.40
codegen_flags: <defaults>
</compile_context>

<pallas_src>
import jax
import jax.numpy as jnp
from jax.experimental import pallas as pl
from jax.experimental.pallas import tpu as pltpu

_LANES = 128                       # lane dim (last)
_SUB = 8                           # sublane granularity / accumulator rows
_TARGET_BLOCK_BYTES = 2 * 1024 * 1024   # per input, per pipeline buffer
_PAD_LOGIT = -1.0e4                # bce(_PAD_LOGIT, 0) == 0 exactly (f32 and bf16)


def _detect_num_cores() -> int:
    """TensorCores the leading 'parallel' grid axis can be sharded over."""
    try:
        kind = jax.devices()[0].device_kind.lower()
    except Exception:
        return 1
    # 2 TCs per chip: v4 / v5p megacore, v7x.  Single TC: v5e / v6e.
    if ("v7" in kind) or ("v4" in kind) or ("v5p" in kind):
        return 2
    return 1


def _make_kernel(block_rows: int):
    rows_per_acc = block_rows // _SUB

    def kernel(pred_ref, psi_ref, std_ref, out_ref):
        t = pl.program_id(1)  # "arbitrary" reduction axis

        @pl.when(t == 0)
        def _():
            out_ref[...] = jnp.zeros_like(out_ref)

        x = pred_ref[...].astype(jnp.float32)                 # logits
        y = psi_ref[...].astype(jnp.float32)                  # targets
        w = std_ref[...].astype(jnp.float32) * 100.0 + 1.0    # bias weight

        # Numerically-stable BCE with logits:
        #   max(x, 0) - x*y + log(1 + exp(-|x|))
        # Padded lanes (x = -1e4, y = 0, w = 1) contribute exactly 0.
        bce = jnp.maximum(x, 0.0) - x * y + jnp.log1p(jnp.exp(-jnp.abs(x)))
        contrib = bce * w

        # Fold the block down to one (8, 128) vreg and add to the output-resident
        # accumulator (tile-preserving reshape; pure VPU adds).
        out_ref[...] += contrib.reshape(rows_per_acc, _SUB, _LANES).sum(axis=0)

    return kernel


def biased_bce_with_logits_loss(pred_psi_val, psi_val, event_std_psi):
    """Pallas TPU version of BiasedBCEWithLogitsLossBasedOnEventStd.forward."""
    pred = jnp.asarray(pred_psi_val).reshape(-1)
    psi = jnp.asarray(psi_val).reshape(-1)
    std = jnp.asarray(event_std_psi).reshape(-1)
    assert pred.shape == psi.shape == std.shape
    n = pred.shape[0]
    assert n > 0, "empty input (PyTorch mean-of-empty is NaN; not supported here)"

    num_cores = _detect_num_cores()

    # ~2 MiB per input per pipeline buffer: 4096 rows (f32) / 8192 rows (bf16).
    itemsize = pred.dtype.itemsize
    max_block_rows = max(_SUB, (_TARGET_BLOCK_BYTES // (_LANES * itemsize)) // _SUB * _SUB)

    rows_needed = pl.cdiv(n, _LANES)
    mini_tiles = pl.cdiv(rows_needed, _SUB)                  # 8-row groups needed
    block_rows = min(max_block_rows, _SUB * pl.cdiv(mini_tiles, num_cores))
    blocks_per_core = pl.cdiv(rows_needed, num_cores * block_rows)
    rows_padded = num_cores * blocks_per_core * block_rows
    n_padded = rows_padded * _LANES

    def to_tiles(a, pad_value):
        if n_padded != n:
            a = jnp.pad(a, (0, n_padded - n), constant_values=pad_value)
        return a.reshape(rows_padded, _LANES)

    in_spec = pl.BlockSpec((block_rows, _LANES),
                           lambda c, t: (c * blocks_per_core + t, 0))
    # Per-core (8, 128) partial-sum tile; index is constant along the reduction
    # axis, so the output block stays VMEM-resident and acts as the accumulator.
    out_spec = pl.BlockSpec((_SUB, _LANES), lambda c, t: (c, 0))

    # NOTE: on v7x, if profiling shows the leading 'parallel' axis is not split
    # across the 2 TensorCores, switch it to pltpu.CORE_PARALLEL.
    partials = pl.pallas_call(
        _make_kernel(block_rows),
        out_shape=jax.ShapeDtypeStruct((num_cores * _SUB, _LANES), jnp.float32),
        grid_spec=pltpu.PrefetchScalarGridSpec(
            num_scalar_prefetch=0,
            grid=(num_cores, blocks_per_core),
            in_specs=[in_spec, in_spec, in_spec],
            out_specs=out_spec,
        ),
        compiler_params=pltpu.CompilerParams(
            dimension_semantics=("parallel", "arbitrary"),
            vmem_limit_bytes=48 * 1024 * 1024),
    )(to_tiles(pred, _PAD_LOGIT), to_tiles(psi, 0.0), to_tiles(std, 0.0))

    # Tiny (num_cores*8, 128) cross-core / cross-lane reduction + mean in XLA.
    return jnp.sum(partials) / jnp.float32(n)


def _reference(pred, psi, std):
    """Pure-JAX reference identical to the PyTorch forward."""
    x = jnp.asarray(pred, jnp.float32).reshape(-1)
    y = jnp.asarray(psi, jnp.float32).reshape(-1)
    w = jnp.asarray(std, jnp.float32).reshape(-1) * 100.0 + 1.0
    bce = jnp.maximum(x, 0.0) - x * y + jnp.log1p(jnp.exp(-jnp.abs(x)))
    return jnp.mean(bce * w)


if __name__ == "__main__":
    key = jax.random.PRNGKey(0)
    k1, k2, k3 = jax.random.split(key, 3)

    # Small shapes: batch=2, seq=100 -> N = 200 (non-multiple of the (8,128)
    # tile, exercising the inert-padding path).
    batch, seq = 2, 100
    pred_psi_val = jax.random.normal(k1, (batch, seq), jnp.float32) * 2.0
    psi_val = jax.random.uniform(k2, (batch, seq), jnp.float32)          # targets in [0,1]
    event_std_psi = jax.random.uniform(k3, (batch, seq), jnp.float32) * 0.2

    loss = jax.block_until_ready(
        biased_bce_with_logits_loss(pred_psi_val, psi_val, event_std_psi))
    ref = _reference(pred_psi_val, psi_val, event_std_psi)
    assert jnp.allclose(loss, ref, rtol=1e-5, atol=1e-6), (loss, ref)

    # Larger, non-aligned N to exercise multi-block accumulation + padding.
    n_big = 3 * 4096 * 128 + 77
    kb1, kb2, kb3 = jax.random.split(jax.random.PRNGKey(1), 3)
    pred_b = jax.random.normal(kb1, (n_big,), jnp.float32) * 2.0
    psi_b = jax.random.uniform(kb2, (n_big,), jnp.float32)
    std_b = jax.random.uniform(kb3, (n_big,), jnp.float32) * 0.2
    loss_b = jax.block_until_ready(biased_bce_with_logits_loss(pred_b, psi_b, std_b))
    ref_b = _reference(pred_b, psi_b, std_b)
    assert jnp.allclose(loss_b, ref_b, rtol=2e-4, atol=1e-6), (loss_b, ref_b)

    print("KERNEL_OK")
</pallas_src>

<mosaic_0001>
module attributes {stable_mosaic.version = 11 : i64} {
  func.func @kernel(%arg0: i32, %arg1: i32, %arg2: memref<8x128xf32, #tpu.memory_space<vmem>>, %arg3: memref<8x128xf32, #tpu.memory_space<vmem>>, %arg4: memref<8x128xf32, #tpu.memory_space<vmem>>, %arg5: memref<8x128xf32, #tpu.memory_space<vmem>>) attributes {dimension_semantics = [#tpu.dimension_semantics<parallel>, #tpu.dimension_semantics<arbitrary>], iteration_bounds = array<i64: 1, 1>, scalar_prefetch = 0 : i64, scratch_operands = 0 : i64, tpu.core_type = #tpu.core_type<tc>, window_params = [{transform_indices = @transform_0, window_bounds = array<i64: 8, 128>}, {transform_indices = @transform_1, window_bounds = array<i64: 8, 128>}, {transform_indices = @transform_2, window_bounds = array<i64: 8, 128>}, {transform_indices = @transform_3, window_bounds = array<i64: 8, 128>}]} {
    %c0_i32 = arith.constant 0 : i32
    %0 = arith.cmpi eq, %arg1, %c0_i32 : i32
    %1 = arith.extui %0 : i1 to i32
    %c0_i32_0 = arith.constant 0 : i32
    %2 = arith.cmpi ne, %1, %c0_i32_0 : i32
    scf.if %2 {
      %cst_14 = arith.constant 0.000000e+00 : f32
      %26 = vector.broadcast %cst_14 : f32 to vector<8x128xf32>
      %c0_15 = arith.constant 0 : index
      %c0_16 = arith.constant 0 : index
      %27 = vector.load %arg5[%c0_15, %c0_16] : memref<8x128xf32, #tpu.memory_space<vmem>>, vector<8x128xf32>
      tpu.vector_store %arg5[%c0_15, %c0_16], %26 {strides = array<i32>} : memref<8x128xf32, #tpu.memory_space<vmem>>, vector<8x128xf32>,
    } else {
    }
    %c0 = arith.constant 0 : index
    %c0_1 = arith.constant 0 : index
    %3 = vector.load %arg2[%c0, %c0_1] : memref<8x128xf32, #tpu.memory_space<vmem>>, vector<8x128xf32>
    %c0_2 = arith.constant 0 : index
    %c0_3 = arith.constant 0 : index
    %4 = vector.load %arg3[%c0_2, %c0_3] : memref<8x128xf32, #tpu.memory_space<vmem>>, vector<8x128xf32>
    %c0_4 = arith.constant 0 : index
    %c0_5 = arith.constant 0 : index
    %5 = vector.load %arg4[%c0_4, %c0_5] : memref<8x128xf32, #tpu.memory_space<vmem>>, vector<8x128xf32>
    %cst = arith.constant 1.000000e+02 : f32
    %6 = vector.broadcast %cst : f32 to vector<8x128xf32>
    %7 = arith.mulf %5, %6 : vector<8x128xf32>
    %cst_6 = arith.constant 1.000000e+00 : f32
    %8 = vector.broadcast %cst_6 : f32 to vector<8x128xf32>
    %9 = arith.addf %7, %8 : vector<8x128xf32>
    %cst_7 = arith.constant 0.000000e+00 : f32
    %10 = vector.broadcast %cst_7 : f32 to vector<8x128xf32>
    %11 = arith.maximumf %3, %10 : vector<8x128xf32>
    %12 = arith.mulf %3, %4 : vector<8x128xf32>
    %13 = arith.subf %11, %12 : vector<8x128xf32>
    %14 = math.absf %3 : vector<8x128xf32>
    %cst_8 = arith.constant 0.000000e+00 : f32
    %15 = vector.broadcast %cst_8 : f32 to vector<8x128xf32>
    %16 = arith.subf %15, %14 : vector<8x128xf32>
    %17 = math.exp %16 : vector<8x128xf32>
    %18 = math.log1p %17 : vector<8x128xf32>
    %19 = arith.addf %13, %18 : vector<8x128xf32>
    %20 = arith.mulf %19, %9 : vector<8x128xf32>
    %c0_9 = arith.constant 0 : index
    %c0_10 = arith.constant 0 : index
    %21 = vector.load %arg5[%c0_9, %c0_10] : memref<8x128xf32, #tpu.memory_space<vmem>>, vector<8x128xf32>
    %22 = vector.shape_cast %20 : vector<8x128xf32> to vector<1x8x128xf32>
    %cst_11 = arith.constant dense<0.000000e+00> : vector<8x128xf32>
    %23 = vector.multi_reduction <add>, %22, %cst_11 [0] : vector<1x8x128xf32> to vector<8x128xf32>
    %24 = arith.addf %21, %23 : vector<8x128xf32>
    %c0_12 = arith.constant 0 : index
    %c0_13 = arith.constant 0 : index
    %25 = vector.load %arg5[%c0_12, %c0_13] : memref<8x128xf32, #tpu.memory_space<vmem>>, vector<8x128xf32>
    tpu.vector_store %arg5[%c0_12, %c0_13], %24 {strides = array<i32>} : memref<8x128xf32, #tpu.memory_space<vmem>>, vector<8x128xf32>,
    return
  }
  func.func @transform_0(%arg0: i32, %arg1: i32) -> (i32, i32) {
    %c1_i32 = arith.constant 1 : i32
    %0 = arith.muli %arg0, %c1_i32 : i32
    %1 = arith.addi %0, %arg1 : i32
    %c0_i32 = arith.constant 0 : i32
    %c0_i32_0 = arith.constant 0 : i32
    return %1, %c0_i32 : i32, i32
  }
  func.func @transform_1(%arg0: i32, %arg1: i32) -> (i32, i32) {
    %c1_i32 = arith.constant 1 : i32
    %0 = arith.muli %arg0, %c1_i32 : i32
    %1 = arith.addi %0, %arg1 : i32
    %c0_i32 = arith.constant 0 : i32
    %c0_i32_0 = arith.constant 0 : i32
    return %1, %c0_i32 : i32, i32
  }
  func.func @transform_2(%arg0: i32, %arg1: i32) -> (i32, i32) {
    %c1_i32 = arith.constant 1 : i32
    %0 = arith.muli %arg0, %c1_i32 : i32
    %1 = arith.addi %0, %arg1 : i32
    %c0_i32 = arith.constant 0 : i32
    %c0_i32_0 = arith.constant 0 : i32
    return %1, %c0_i32 : i32, i32
  }
  func.func @transform_3(%arg0: i32, %arg1: i32) -> (i32, i32) {
    %c0_i32 = arith.constant 0 : i32
    %c0_i32_0 = arith.constant 0 : i32
    return %arg0, %c0_i32 : i32, i32
  }
}

</mosaic_0001>

<bundles_post_ra>
// kernel: tpu_custom_call.1
= control target key start
LH: loop header
LB: loop body
LE: loop exit
PB: predicated region body
PF: predicated region fallthrough
CT: control target
= control target key end

     0   :  { %8 = vsyncpa [#allocation3], 0  ;;  %s265_s0 = inlined_call_operand.hbm [shape: f32[8,128], index: 0, kind: input, shape index: {}]   ;;  %s266_s1 = inlined_call_operand.hbm [shape: f32[8,128], index: 1, kind: input, shape index: {}]   ;;  %s267_s2 = inlined_call_operand.hbm [shape: f32[8,128], index: 2, kind: input, shape index: {}]   ;;  %s268_s3 = inlined_call_operand.hbm [shape: f32[8,128], index: 3, kind: output, shape index: {}]  }
   0x1   :  { %9 = vsyncpa [#allocation6], 0  ;;  %s33_s14 = sshll.u32 %s266_s1, 4  ;;  %s34_s14 = int_to_ptr.hbm [resolvable:$true] %s33_s14 }
   0x2   :  { %10 = vsyncpa [#allocation4], 0  ;;  %s229_s15 = smov [#allocation5]   ;;  %s19_s19 = sshll.u32 %s265_s0, 4  ;;  %s20_s19 = int_to_ptr.hbm [resolvable:$true] %s19_s19 }
   0x3   :  { %s35_s16 = sshll.u32 %s229_s15, 4  ;;  %s230_s20 = smov [#allocation2]   ;;  %s36_s16 = int_to_ptr.vmem [resolvable:$true] %s35_s16 }
   0x4   :  { %38 = dma.hbm_to_vmem [thread:$0]  %s34_s14, 128, %s36_s16, [#allocation6]  }
   0x5   :  { %s21_s21 = sshll.u32 %s230_s20, 4  ;;  %s47_s24 = sshll.u32 %s267_s2, 4  ;;  %s22_s21 = int_to_ptr.vmem [resolvable:$true] %s21_s21  ;;  %s48_s24 = int_to_ptr.hbm [resolvable:$true] %s47_s24 }
   0x6   :  { %24 = dma.hbm_to_vmem [thread:$0]  %s20_s19, 128, %s22_s21, [#allocation3]  }
   0x7   :  { %s231_s1 = smov [#allocation7]  }
   0x8   :  { %s49_s25 = sshll.u32 %s231_s1, 4  ;;  %s50_s25 = int_to_ptr.vmem [resolvable:$true] %s49_s25 }
   0x9   :  { %52 = dma.hbm_to_vmem [thread:$0]  %s48_s24, 128, %s50_s25, [#allocation6]  }
   0xa   :  { %223 = dma.done.wait [#allocation3], 128  }
   0xb   :  { %224 = vsyncadd [#allocation3], 4294967168 }
   0xc   :  { %225 = dma.done.wait [#allocation6], 256  }
   0xd   :  { %226 = vsyncadd [#allocation6], 4294967040  ;;  %v73_v0 = vld [vmem:[#allocation2] sm:$0xff]  ;;  %v74_v7 = vld [vmem:[#allocation5] sm:$0xff]  ;;  %s232_s0 = smov [#allocation8]   ;;  %s107_s28 = sshll.u32 %s268_s3, 4  ;;  %s108_s28 = int_to_ptr.hbm [resolvable:$true] %s107_s28 }
   0xe   :  { %v81_v1 = vand.u32 2147483647, %v73_v0  ;;  %v75_v8 = vld [vmem:[#allocation7] sm:$0xff]  ;;  %v78_v10 = vmax.f32 %v73_v0, 0.0  ;;  %v79_v11 = vmul.f32 %v74_v7, %v73_v0  ;;  %s105_s2 = sshll.u32 %s232_s0, 4  ;;  %s106_s2 = int_to_ptr.vmem [resolvable:$true] %s105_s2 }
   0xf   :  { %v76_v13 = vmul.f32 100.0, %v75_v8 }
  0x10   :  { %v82_v2 = vsub.f32 0.0, %v81_v1  ;;  %v80_v16 = vsub.f32 %v78_v10, %v79_v11 }
  0x11   :  { %v77_v18 = vadd.f32 1.0, %v76_v13 }
  0x12   :  { %v83_v3 = vmul.f32 1.442695, %v82_v2 }
  0x14   :  { %123 = vpow2.f32 %v83_v3 }
  0x1a   :  { %v124_v4 = vpop.eup %123 }
  0x1b   :  { %v85_v5 = vadd.f32 1.0, %v124_v4  ;;  %v88_v6 = vmul.f32 -0.5, %v124_v4  ;;  %v91_v12 = vand.u32 2147483647, %v124_v4 }
  0x1d   :  { %125 = vlog2.f32 %v85_v5  ;;  %v89_v9 = vadd.f32 1.0, %v88_v6  ;;  %vm92_vm0 = vcmp.lt.f32.partialorder %v91_v12, 0.0004427343 }
  0x1f   :  { %v90_v14 = vmul.f32 %v124_v4, %v89_v9 }
  0x23   :  { %v126_v15 = vpop.eup %125 }
  0x24   :  { %v87_v17 = vmul.f32 0.6931472, %v126_v15 }
  0x26   :  { %v93_v19 = vsel %vm92_vm0, %v90_v14, %v87_v17 }
  0x27   :  { %v94_v20 = vadd.f32 %v93_v19, %v80_v16 }
  0x29   :  { %v95_v21 = vmul.f32 %v94_v20, %v77_v18 }
  0x2b   :  { %99 = vst [vmem:[#allocation8] sm:$0xff] %v95_v21 }
  0x2c   :  { %110 = dma.vmem_to_hbm [thread:$0]  %s106_s2, 128, %s108_s28, [#allocation4]  }
  0x2d   :  { %227 = dma.done.wait [#allocation4], 128  }
  0x2e   :  { %228 = vsyncadd [#allocation4], 4294967168 }
  0x2f   :  { %115 = vsyncpa [#allocation3], 1 }
  0x30   :  { %116 = vsyncpa [#allocation6], 1 }
  0x31   :  { %117 = vsyncpa [#allocation4], 1 }

</bundles_post_ra>
